<compile_context>
chip_gen: v7x
topology: tpu7x:2x2x1
jax: 0.10.0
libtpu: 0.0.40
codegen_flags: <defaults>
</compile_context>

<pallas_src>
import jax
import jax.numpy as jnp
from jax import lax
from jax.experimental import pallas as pl
from jax.experimental.pallas import tpu as pltpu


def _pick_tile(n_pad, target):
    """Largest multiple of 128 that divides n_pad (itself a multiple of 128) and <= target."""
    best = 128
    t = 128
    while t <= min(target, n_pad):
        if n_pad % t == 0:
            best = t
        t += 128
    return best


def _make_flash_kernel(n_valid, n_pad, tk):
    masked = n_pad != n_valid

    def kernel(q_ref, k_ref, v_ref, o_ref, m_sc, l_sc, acc_sc):
        # q_ref : [1, Cq, TQ]  channel-major query tile
        # k_ref : [1, TK, Cq]  pixel-major key tile
        # v_ref : [1, C,  TK]  channel-major value tile
        # o_ref : [1, C,  TQ]
        # m_sc / l_sc : [1, TQ] f32,  acc_sc : [C, TQ] f32
        ki = pl.program_id(2)

        @pl.when(ki == 0)
        def _init():
            m_sc[...] = jnp.full_like(m_sc, -1e30)
            l_sc[...] = jnp.zeros_like(l_sc)
            acc_sc[...] = jnp.zeros_like(acc_sc)

        # e[j, i] = <k_j, q_i>  -> [TK, TQ]; both operands feed the MXU in native layout.
        e = jnp.dot(k_ref[0], q_ref[0], preferred_element_type=jnp.float32)

        if masked:
            # Mask padded key rows (only ever hits the last key tile: padding < 128 <= TK).
            key_idx = ki * tk + lax.broadcasted_iota(jnp.int32, (e.shape[0], 1), 0)
            e = jnp.where(key_idx < n_valid, e, -1e30)

        # Online softmax over the key axis (axis 0 of e).
        m_prev = m_sc[...]                                               # [1, TQ]
        m_new = jnp.maximum(m_prev, jnp.max(e, axis=0, keepdims=True))
        alpha = jnp.exp(m_prev - m_new)                                  # [1, TQ]
        # TODO(synk): compute p in bf16 on v6e/v7x (bf16 EUP, ~2x exp rate); kept f32 for v5e.
        p = jnp.exp(e - m_new)                                           # [TK, TQ] f32
        l_sc[...] = alpha * l_sc[...] + jnp.sum(p, axis=0, keepdims=True)
        acc_sc[...] = alpha * acc_sc[...] + jnp.dot(
            v_ref[0], p.astype(v_ref.dtype), preferred_element_type=jnp.float32)
        m_sc[...] = m_new

        @pl.when(ki == pl.num_programs(2) - 1)
        def _finalize():
            inv_l = pl.reciprocal(l_sc[...], approx=True)                # EUP vrcp
            o_ref[0] = (acc_sc[...] * inv_l).astype(o_ref.dtype)

    return kernel


def cat_only_attention(x_ccd, x_dem, params, *, tq=None, tk=None,
                       compute_dtype=jnp.bfloat16):
    """x_ccd, x_dem: [B, C, H, W] (NCHW). Returns [B, C, H, W]."""
    B, C, H, W = x_ccd.shape
    N = H * W
    Cq = params["wq"].shape[0]          # C // 8

    # NCHW -> channel-major [B, C, N]: reshape only, no HBM transpose.
    xc = x_ccd.reshape(B, C, N)
    xd = x_dem.reshape(B, C, N)

    # 1x1-conv projections hoisted out of the kernel (computed exactly once), with
    # Wk/Wv stacked into a single GEMM to better fill the MXU sublane dimension.
    wq = params["wq"].reshape(Cq, C)
    wk = params["wk"].reshape(Cq, C)
    wv = params["wv"].reshape(C, C)
    wkv = jnp.concatenate([wk, wv], axis=0)                                  # [Cq+C, C]
    bkv = jnp.concatenate([params["bk"], params["bv"]], axis=0)              # [Cq+C]
    q = jnp.einsum("oc,bcn->bon", wq, xc) + params["bq"][None, :, None]      # [B, Cq, N]
    kv = jnp.einsum("oc,bcn->bon", wkv, xd) + bkv[None, :, None]             # [B, Cq+C, N]
    k = jnp.transpose(kv[:, :Cq, :], (0, 2, 1))   # [B, N, Cq] pixel-major (smallest tensor)
    v = kv[:, Cq:, :]                             # [B, C, N]  channel-major

    # bf16 into the MXU; softmax state / accumulation stay f32 inside the kernel.
    q = q.astype(compute_dtype)
    k = k.astype(compute_dtype)
    v = v.astype(compute_dtype)

    # Pad the pixel axis to a multiple of 128: padded keys are masked to -1e30 logits
    # in the kernel, padded query rows are discarded after the call.
    n_pad = ((N + 127) // 128) * 128
    if n_pad != N:
        pad = n_pad - N
        q = jnp.pad(q, ((0, 0), (0, 0), (0, pad)))
        k = jnp.pad(k, ((0, 0), (0, pad), (0, 0)))
        v = jnp.pad(v, ((0, 0), (0, 0), (0, pad)))

    # Lane-dense tiles (multiples of 128) dividing n_pad. Larger TQ reduces the K/V
    # refetch factor (n_pad/tq); 512 keeps VMEM well under v7x's 64 MiB even at C=512.
    # (On v5e/v6e with 128 MiB VMEM, a larger tk, e.g. 1024, is also fine.)
    if tq is None:
        tq = _pick_tile(n_pad, 512)
    if tk is None:
        tk = _pick_tile(n_pad, 512)
    assert n_pad % tq == 0 and n_pad % tk == 0, (n_pad, tq, tk)

    n_q_tiles = n_pad // tq
    in_size = jnp.dtype(compute_dtype).itemsize
    out_size = jnp.dtype(x_ccd.dtype).itemsize
    cost = pl.CostEstimate(
        flops=2 * B * n_pad * n_pad * (Cq + C),
        transcendentals=B * n_pad * n_pad,
        bytes_accessed=(B * n_pad * Cq * in_size                         # q, read once
                        + n_q_tiles * B * n_pad * (Cq + C) * in_size     # k/v, refetched per q tile
                        + B * n_pad * C * out_size),                     # output
    )

    kernel = _make_flash_kernel(N, n_pad, tk)
    out = pl.pallas_call(
        kernel,
        out_shape=jax.ShapeDtypeStruct((B, C, n_pad), x_ccd.dtype),
        grid_spec=pltpu.PrefetchScalarGridSpec(
            num_scalar_prefetch=0,
            grid=(B, n_pad // tq, n_pad // tk),
            in_specs=[
                pl.BlockSpec((1, Cq, tq), lambda b, qi, ki: (b, 0, qi)),   # q (channel-major)
                pl.BlockSpec((1, tk, Cq), lambda b, qi, ki: (b, ki, 0)),   # k (pixel-major)
                pl.BlockSpec((1, C, tk), lambda b, qi, ki: (b, 0, ki)),    # v (channel-major)
            ],
            out_specs=pl.BlockSpec((1, C, tq), lambda b, qi, ki: (b, 0, qi)),
            scratch_shapes=[
                pltpu.VMEM((1, tq), jnp.float32),     # running max
                pltpu.VMEM((1, tq), jnp.float32),     # running denominator
                pltpu.VMEM((C, tq), jnp.float32),     # output accumulator
            ],
        ),
        compiler_params=pltpu.CompilerParams(
            # b and qi shard across v7x's two TensorCores; ki is the reduction axis.
            dimension_semantics=("parallel", "parallel", "arbitrary"),
            # ~75% of v7x's 64 MiB physical VMEM; raise toward ~100 MiB on v5e/v6e
            # (128 MiB) if using larger tiles / deeper buffering.
            vmem_limit_bytes=48 * 1024 * 1024,
        ),
        cost_estimate=cost,
    )(q, k, v)

    # Drop padded queries; [B, C, N] -> NCHW is a pure reshape (channel-major output).
    return out[:, :, :N].reshape(B, C, H, W)


def _reference(x_ccd, x_dem, params):
    """Pure-JAX f32 reference matching the PyTorch forward exactly."""
    B, C, H, W = x_ccd.shape
    N = H * W
    Cq = params["wq"].shape[0]
    wq = params["wq"].reshape(Cq, C)
    wk = params["wk"].reshape(Cq, C)
    wv = params["wv"].reshape(C, C)
    xc = x_ccd.reshape(B, C, N)
    xd = x_dem.reshape(B, C, N)
    q = jnp.einsum("oc,bcn->bon", wq, xc) + params["bq"][None, :, None]   # [B, Cq, N]
    k = jnp.einsum("oc,bcn->bon", wk, xd) + params["bk"][None, :, None]   # [B, Cq, N]
    v = jnp.einsum("oc,bcn->bon", wv, xd) + params["bv"][None, :, None]   # [B, C,  N]
    energy = jnp.einsum("bcn,bcm->bnm", q, k)          # [B, Nq, Nk]
    attn = jax.nn.softmax(energy, axis=-1)
    out = jnp.einsum("bcm,bnm->bcn", v, attn)          # [B, C, Nq]
    return out.reshape(B, C, H, W)


def init_params(key, in_channels):
    """Deterministic synthetic init matching nn.Conv2d(k=1) parameter shapes."""
    Cq = in_channels // 8
    ks = jax.random.split(key, 6)

    def u(k, shape, fan_in):
        bound = 1.0 / jnp.sqrt(fan_in)
        return jax.random.uniform(k, shape, jnp.float32, -bound, bound)

    return {
        "wq": u(ks[0], (Cq, in_channels, 1, 1), in_channels),
        "bq": u(ks[1], (Cq,), in_channels),
        "wk": u(ks[2], (Cq, in_channels, 1, 1), in_channels),
        "bk": u(ks[3], (Cq,), in_channels),
        "wv": u(ks[4], (in_channels, in_channels, 1, 1), in_channels),
        "bv": u(ks[5], (in_channels,), in_channels),
        # gamma exists in __init__ but is never used in forward
        "gamma": jnp.zeros((1,), jnp.float32),
    }


if __name__ == "__main__":
    key = jax.random.PRNGKey(0)
    # N = 18*18 = 324 is NOT a multiple of 128 -> exercises the padding/masking path;
    # tq = tk = 128 gives a 3x3 tile grid per batch -> exercises the flash loop.
    B, C, H, W = 2, 32, 18, 18
    k1, k2, k3 = jax.random.split(key, 3)
    x_ccd = jax.random.normal(k1, (B, C, H, W), jnp.float32)
    x_dem = jax.random.normal(k2, (B, C, H, W), jnp.float32)
    params = init_params(k3, C)

    out = cat_only_attention(x_ccd, x_dem, params, tq=128, tk=128)
    out = jax.block_until_ready(out)

    ref = _reference(x_ccd, x_dem, params)
    assert out.shape == (B, C, H, W)
    max_err = float(jnp.max(jnp.abs(out - ref)))
    # bf16 MXU inputs with f32 accumulation -> bf16-level agreement with the f32 reference.
    assert jnp.allclose(out, ref, atol=5e-2, rtol=5e-2), \
        f"mismatch vs reference (max |err|={max_err})"

    print("KERNEL_OK")
</pallas_src>

<mosaic_0001>
module attributes {stable_mosaic.version = 11 : i64} {
  func.func @kernel(%arg0: i32, %arg1: i32, %arg2: i32, %arg3: memref<1x4x128xbf16, #tpu.memory_space<vmem>>, %arg4: memref<1x128x4xbf16, #tpu.memory_space<vmem>>, %arg5: memref<1x32x128xbf16, #tpu.memory_space<vmem>>, %arg6: memref<1x32x128xf32, #tpu.memory_space<vmem>>, %arg7: memref<1x128xf32, #tpu.memory_space<vmem>>, %arg8: memref<1x128xf32, #tpu.memory_space<vmem>>, %arg9: memref<32x128xf32, #tpu.memory_space<vmem>>) attributes {dimension_semantics = [#tpu.dimension_semantics<parallel>, #tpu.dimension_semantics<parallel>, #tpu.dimension_semantics<arbitrary>], iteration_bounds = array<i64: 2, 3, 3>, scalar_prefetch = 0 : i64, scratch_operands = 3 : i64, tpu.core_type = #tpu.core_type<tc>, window_params = [{transform_indices = @transform_0, window_bounds = array<i64: 1, 4, 128>}, {transform_indices = @transform_1, window_bounds = array<i64: 1, 128, 4>}, {transform_indices = @transform_2, window_bounds = array<i64: 1, 32, 128>}, {transform_indices = @transform_3, window_bounds = array<i64: 1, 32, 128>}]} {
    %c0_i32 = arith.constant 0 : i32
    %0 = arith.cmpi eq, %arg2, %c0_i32 : i32
    %1 = arith.extui %0 : i1 to i32
    %c0_i32_0 = arith.constant 0 : i32
    %2 = arith.cmpi ne, %1, %c0_i32_0 : i32
    scf.if %2 {
      %cst_26 = arith.constant -1.000000e+30 : f32
      %46 = vector.broadcast %cst_26 : f32 to vector<1x128xf32>
      %c0_27 = arith.constant 0 : index
      %c0_28 = arith.constant 0 : index
      %47 = vector.load %arg7[%c0_27, %c0_28] : memref<1x128xf32, #tpu.memory_space<vmem>>, vector<1x128xf32>
      tpu.vector_store %arg7[%c0_27, %c0_28], %46 {strides = array<i32>} : memref<1x128xf32, #tpu.memory_space<vmem>>, vector<1x128xf32>,
      %cst_29 = arith.constant 0.000000e+00 : f32
      %48 = vector.broadcast %cst_29 : f32 to vector<1x128xf32>
      %c0_30 = arith.constant 0 : index
      %c0_31 = arith.constant 0 : index
      %49 = vector.load %arg8[%c0_30, %c0_31] : memref<1x128xf32, #tpu.memory_space<vmem>>, vector<1x128xf32>
      tpu.vector_store %arg8[%c0_30, %c0_31], %48 {strides = array<i32>} : memref<1x128xf32, #tpu.memory_space<vmem>>, vector<1x128xf32>,
      %cst_32 = arith.constant 0.000000e+00 : f32
      %50 = vector.broadcast %cst_32 : f32 to vector<32x128xf32>
      %c0_33 = arith.constant 0 : index
      %c0_34 = arith.constant 0 : index
      %51 = vector.load %arg9[%c0_33, %c0_34] : memref<32x128xf32, #tpu.memory_space<vmem>>, vector<32x128xf32>
      tpu.vector_store %arg9[%c0_33, %c0_34], %50 {strides = array<i32>} : memref<32x128xf32, #tpu.memory_space<vmem>>, vector<32x128xf32>,
    } else {
    }
    %c0 = arith.constant 0 : index
    %c0_1 = arith.constant 0 : index
    %c0_2 = arith.constant 0 : index
    %3 = vector.load %arg4[%c0, %c0_1, %c0_2] : memref<1x128x4xbf16, #tpu.memory_space<vmem>>, vector<1x128x4xbf16>
    %4 = vector.shape_cast %3 : vector<1x128x4xbf16> to vector<128x4xbf16>
    %c0_3 = arith.constant 0 : index
    %c0_4 = arith.constant 0 : index
    %c0_5 = arith.constant 0 : index
    %5 = vector.load %arg3[%c0_3, %c0_4, %c0_5] : memref<1x4x128xbf16, #tpu.memory_space<vmem>>, vector<1x4x128xbf16>
    %6 = vector.shape_cast %5 : vector<1x4x128xbf16> to vector<4x128xbf16>
    %cst = arith.constant dense<0.000000e+00> : vector<128x128xf32>
    %7 = tpu.matmul %4, %6, %cst {dimension_numbers = #tpu.dot_dimension_numbers<[1], [0], [0], [1], [0, 0, 1, 1], [], []>} : vector<128x4xbf16>, vector<4x128xbf16>, vector<128x128xf32> -> vector<128x128xf32>
    %c128_i32 = arith.constant 128 : i32
    %8 = arith.muli %arg2, %c128_i32 : i32
    %9 = tpu.iota {dimensions = array<i32: 0>} : vector<128x1xi32>
    %10 = vector.broadcast %8 : i32 to vector<128x1xi32>
    %11 = arith.addi %10, %9 : vector<128x1xi32>
    %c324_i32 = arith.constant 324 : i32
    %12 = vector.broadcast %c324_i32 : i32 to vector<128x1xi32>
    %13 = arith.cmpi slt, %11, %12 : vector<128x1xi32>
    %cst_6 = arith.constant -1.000000e+30 : f32
    %14 = vector.shape_cast %13 : vector<128x1xi1> to vector<128x1xi1>
    %15 = vector.broadcast %14 : vector<128x1xi1> to vector<128x128xi1>
    %16 = vector.broadcast %cst_6 : f32 to vector<128x128xf32>
    %17 = arith.select %15, %7, %16 : vector<128x128xi1>, vector<128x128xf32>
    %c0_7 = arith.constant 0 : index
    %c0_8 = arith.constant 0 : index
    %18 = vector.load %arg7[%c0_7, %c0_8] : memref<1x128xf32, #tpu.memory_space<vmem>>, vector<1x128xf32>
    %cst_9 = arith.constant dense<0xFF800000> : vector<128xf32>
    %19 = vector.multi_reduction <maximumf>, %17, %cst_9 [0] : vector<128x128xf32> to vector<128xf32>
    %20 = vector.shape_cast %19 : vector<128xf32> to vector<1x128xf32>
    %21 = arith.maximumf %18, %20 : vector<1x128xf32>
    %22 = arith.subf %18, %21 : vector<1x128xf32>
    %23 = math.exp %22 : vector<1x128xf32>
    %24 = vector.broadcast %21 : vector<1x128xf32> to vector<128x128xf32>
    %25 = arith.subf %17, %24 : vector<128x128xf32>
    %26 = math.exp %25 : vector<128x128xf32>
    %c0_10 = arith.constant 0 : index
    %c0_11 = arith.constant 0 : index
    %27 = vector.load %arg8[%c0_10, %c0_11] : memref<1x128xf32, #tpu.memory_space<vmem>>, vector<1x128xf32>
    %28 = arith.mulf %23, %27 : vector<1x128xf32>
    %cst_12 = arith.constant dense<0.000000e+00> : vector<128xf32>
    %29 = vector.multi_reduction <add>, %26, %cst_12 [0] : vector<128x128xf32> to vector<128xf32>
    %30 = vector.shape_cast %29 : vector<128xf32> to vector<1x128xf32>
    %31 = arith.addf %28, %30 : vector<1x128xf32>
    %c0_13 = arith.constant 0 : index
    %c0_14 = arith.constant 0 : index
    %32 = vector.load %arg8[%c0_13, %c0_14] : memref<1x128xf32, #tpu.memory_space<vmem>>, vector<1x128xf32>
    tpu.vector_store %arg8[%c0_13, %c0_14], %31 {strides = array<i32>} : memref<1x128xf32, #tpu.memory_space<vmem>>, vector<1x128xf32>,
    %c0_15 = arith.constant 0 : index
    %c0_16 = arith.constant 0 : index
    %33 = vector.load %arg9[%c0_15, %c0_16] : memref<32x128xf32, #tpu.memory_space<vmem>>, vector<32x128xf32>
    %34 = vector.broadcast %23 : vector<1x128xf32> to vector<32x128xf32>
    %35 = arith.mulf %34, %33 : vector<32x128xf32>
    %c0_17 = arith.constant 0 : index
    %c0_18 = arith.constant 0 : index
    %c0_19 = arith.constant 0 : index
    %36 = vector.load %arg5[%c0_17, %c0_18, %c0_19] : memref<1x32x128xbf16, #tpu.memory_space<vmem>>, vector<1x32x128xbf16>
    %37 = vector.shape_cast %36 : vector<1x32x128xbf16> to vector<32x128xbf16>
    %38 = arith.truncf %26 : vector<128x128xf32> to vector<128x128xbf16>
    %cst_20 = arith.constant dense<0.000000e+00> : vector<32x128xf32>
    %39 = tpu.matmul %37, %38, %cst_20 {dimension_numbers = #tpu.dot_dimension_numbers<[1], [0], [0], [1], [0, 0, 1, 1], [], []>} : vector<32x128xbf16>, vector<128x128xbf16>, vector<32x128xf32> -> vector<32x128xf32>
    %40 = arith.addf %35, %39 : vector<32x128xf32>
    %c0_21 = arith.constant 0 : index
    %c0_22 = arith.constant 0 : index
    %41 = vector.load %arg9[%c0_21, %c0_22] : memref<32x128xf32, #tpu.memory_space<vmem>>, vector<32x128xf32>
    tpu.vector_store %arg9[%c0_21, %c0_22], %40 {strides = array<i32>} : memref<32x128xf32, #tpu.memory_space<vmem>>, vector<32x128xf32>,
    %c0_23 = arith.constant 0 : index
    %c0_24 = arith.constant 0 : index
    %42 = vector.load %arg7[%c0_23, %c0_24] : memref<1x128xf32, #tpu.memory_space<vmem>>, vector<1x128xf32>
    tpu.vector_store %arg7[%c0_23, %c0_24], %21 {strides = array<i32>} : memref<1x128xf32, #tpu.memory_space<vmem>>, vector<1x128xf32>,
    %c2_i32 = arith.constant 2 : i32
    %43 = arith.cmpi eq, %arg2, %c2_i32 : i32
    %44 = arith.extui %43 : i1 to i32
    %c0_i32_25 = arith.constant 0 : i32
    %45 = arith.cmpi ne, %44, %c0_i32_25 : i32
    scf.if %45 {
      %c0_26 = arith.constant 0 : index
      %c0_27 = arith.constant 0 : index
      %46 = vector.load %arg8[%c0_26, %c0_27] : memref<1x128xf32, #tpu.memory_space<vmem>>, vector<1x128xf32>
      %47 = tpu.reciprocal %46 {approx = true} : vector<1x128xf32> -> vector<1x128xf32>
      %c0_28 = arith.constant 0 : index
      %c0_29 = arith.constant 0 : index
      %48 = vector.load %arg9[%c0_28, %c0_29] : memref<32x128xf32, #tpu.memory_space<vmem>>, vector<32x128xf32>
      %49 = vector.broadcast %47 : vector<1x128xf32> to vector<32x128xf32>
      %50 = arith.mulf %48, %49 : vector<32x128xf32>
      %c0_30 = arith.constant 0 : index
      %c0_31 = arith.constant 0 : index
      %c0_32 = arith.constant 0 : index
      %51 = vector.load %arg6[%c0_30, %c0_31, %c0_32] : memref<1x32x128xf32, #tpu.memory_space<vmem>>, vector<1x32x128xf32>
      %52 = vector.shape_cast %51 : vector<1x32x128xf32> to vector<32x128xf32>
      %53 = vector.shape_cast %50 : vector<32x128xf32> to vector<1x32x128xf32>
      tpu.vector_store %arg6[%c0_30, %c0_31, %c0_32], %53 {strides = array<i32>} : memref<1x32x128xf32, #tpu.memory_space<vmem>>, vector<1x32x128xf32>,
    } else {
    }
    return
  }
  func.func @transform_0(%arg0: i32, %arg1: i32, %arg2: i32) -> (i32, i32, i32) {
    %c0_i32 = arith.constant 0 : i32
    %c0_i32_0 = arith.constant 0 : i32
    return %arg0, %c0_i32, %arg1 : i32, i32, i32
  }
  func.func @transform_1(%arg0: i32, %arg1: i32, %arg2: i32) -> (i32, i32, i32) {
    %c0_i32 = arith.constant 0 : i32
    %c0_i32_0 = arith.constant 0 : i32
    return %arg0, %arg2, %c0_i32 : i32, i32, i32
  }
  func.func @transform_2(%arg0: i32, %arg1: i32, %arg2: i32) -> (i32, i32, i32) {
    %c0_i32 = arith.constant 0 : i32
    %c0_i32_0 = arith.constant 0 : i32
    return %arg0, %c0_i32, %arg2 : i32, i32, i32
  }
  func.func @transform_3(%arg0: i32, %arg1: i32, %arg2: i32) -> (i32, i32, i32) {
    %c0_i32 = arith.constant 0 : i32
    %c0_i32_0 = arith.constant 0 : i32
    return %arg0, %c0_i32, %arg1 : i32, i32, i32
  }
}

</mosaic_0001>

<bundles_post_ra>
// kernel: tpu_custom_call.1
= control target key start
LH: loop header
LB: loop body
LE: loop exit
PB: predicated region body
PF: predicated region fallthrough
CT: control target
= control target key end

     0   :  { %s1736_s0 = inlined_call_operand.vmem [shape: bf16[2,4,384], index: 0, kind: input, shape index: {}]   ;;  %s1737_s1 = inlined_call_operand.vmem [shape: bf16[2,384,4], index: 1, kind: input, shape index: {}]   ;;  %s1738_s2 = inlined_call_operand.vmem [shape: bf16[2,32,384], index: 2, kind: input, shape index: {}]   ;;  %s1739_s3 = inlined_call_operand.hbm [shape: f32[2,32,384], index: 3, kind: output, shape index: {}]  }
   0x1   :  { %1748 = sst [smem:[#allocation18_spill]] %s1738_s2 }
   0x2   :  { %8 = vsyncpa [#allocation7], 0 }
   0x3   :  { %10 = vsyncpa [#allocation7 + $0x1], 0  ;;  %s1379_s12 = smov 0   ;;  %s1381_s13 = smov 0  }
   0x4   :  { %s1383_s14 = smov 0   ;;  %s1385_s15 = smov 0  }
   0x5   :  { %s1387_s16 = smov 0   ;;  %s1389_s17 = smov 0  }
   0x6   :  { %s1391_s18 = smov 0   ;;  %s1393_s19 = smov 0  }
   0x7   :  { %s1395_s20 = smov 0   ;;  %s1397_s21 = smov 0  }
   0x8   :  { %s1399_s22 = smov 0   ;;  %s1401_s23 = smov 0  }
   0x9 LB: > { %1749 = sst [smem:[#allocation9_spill]] %s1323_s16  ;;  %s972_s24 = sadd.s32 4294967295, %s1351_s23   ;;  %s1351_s23 = sphi %s1401_s23, %s16_s23   ;;  %s1347_s22 = sphi %s1399_s22, %s1771_s22   ;;  %s1343_s21 = sphi %s1397_s21, %s1775_s21   ;;  %s1339_s20 = sphi %s1395_s20, %s1769_s20   ;;  %s1335_s19 = sphi %s1393_s19, %s1768_s19   ;;  %s1331_s18 = sphi %s1391_s18, %s1767_s18   ;;  %s1327_s17 = sphi %s1389_s17, %s1766_s17   ;;  %s1323_s16 = sphi %s1387_s16, %s1765_s16   ;;  %s1319_s15 = sphi %s1385_s15, %s1764_s15   ;;  %s1315_s14 = sphi %s1383_s14, %s1774_s14   ;;  %s1311_s13 = sphi %s1381_s13, %s1773_s13   ;;  %s1307_s12 = sphi %s1379_s12, %s1772_s12  }
   0xa   : > { %1750 = sst [smem:[#allocation10_spill]] %s1339_s20  ;;  %s28_s25 = sadd.s32 1, %s1339_s20 }
   0xb   : > { %1751 = sst [smem:[#allocation11_spill]] %s1343_s21  ;;  %p29_p0 = scmp.ge.s32.totalorder %s28_s25, 3 }
   0xc   : > { %1752 = sst [smem:[#allocation12_spill]] %s1347_s22  ;;  %s31_s26 = sadd.s32 1, %s1343_s21 }
   0xd   : > { %s973_s27 = sadd.s32 4294967294, %s1351_s23   ;;  %p107_p1 = scmp.ne.s32.totalorder %s1323_s16, %s1319_s15 }
   0xe   : > { %s1777_s25 = smov (%p29_p0, %s28_s25), 0  ;;  %s1779_s26 = smov (!%p29_p0, %s31_s26), %s1343_s21 }
   0xf   : > { %1753 = sst [smem:[#allocation13_spill]] %s1777_s25  ;;  %s35_s28 = sadd.s32 1, %s1347_s22 }
  0x10   : > { %p108_p2 = scmp.eq.s32.totalorder %s1351_s23, 0  ;;  %p33_p3 = scmp.ge.s32.totalorder %s1779_s26, 3 }
  0x11   : > { %s96_s29 = ssub.s32 %s1339_s20, %s1777_s25  ;;  %p138_p5 = scmp.ne.s32.totalorder %s1315_s14, %s1311_s13 }
  0x12   : > { %p1452_p4 = por %p108_p2, %p107_p1  ;;  %s1781_s26 = smov (%p33_p3, %s1779_s26), 0 }
  0x13   : > { %1755 = sst [smem:[#allocation14_spill]] %s1781_s26  ;;  %s1783_s28 = smov (!%p33_p3, %s35_s28), %s1347_s22 }
  0x14   : > { %s124_s4 = ssub.s32 %s1343_s21, %s1781_s26  ;;  %p139_p6 = scmp.eq.s32.totalorder %s972_s24, 17 }
  0x15   : > { %p37_p7 = scmp.ge.s32.totalorder %s1783_s28, 2  ;;  %p144_p8 = scmp.ne.s32.totalorder %s1311_s13, %s1307_s12 }
  0x16   : > { %p1465_p9 = por %p139_p6, %p138_p5  ;;  %p145_p10 = scmp.eq.s32.totalorder %s973_s27, 17 }
  0x17   : > { %s1785_s28 = smov (%p37_p7, %s1783_s28), 0  ;;  %s100_s6 = sadd.s32 1, %s1323_s16 }
  0x18   : > { %1757 = sst [smem:[#allocation15_spill]] %s1785_s28  ;;  %p1472_p11 = por %p145_p10, %p144_p8 }
  0x19   : > { %s95_s8 = ssub.s32 %s1347_s22, %s1785_s28  ;;  %s128_s9 = sadd.s32 1, %s1315_s14 }
  0x1a   : > { %s97_s10 = sor.u32 %s96_s29, %s95_s8  ;;  %s125_s11 = sor.u32 %s124_s4, %s95_s8 }
  0x1b   : > { %p98_p12 = scmp.eq.s32.totalorder %s97_s10, 0  ;;  %p126_p13 = scmp.eq.s32.totalorder %s125_s11, 0 }
  0x1c   : > { %p975_p0 = scmp.ge.s32.totalorder %s1351_s23, 18 }
  0x1d   : > { %s1480_s24 = scalar_select %p98_p12, %s1323_s16, %s100_s6  }
  0x1e   : > { %s1483_s26 = scalar_select %p126_p13, %s1315_s14, %s128_s9  }
  0x1f   : > { %1759 = sst [smem:[#allocation16_spill]] %s1480_s24  ;;  %161 = sbr.rel (%p975_p0) target bundleno = 50 (0x32), region = 16 }
  0x20   : > { %1760 = sst [smem:[#allocation17_spill]] %s1483_s26 }
  0x26   : > { %188 = sbr.rel (!%p1452_p4) target bundleno = 50 (0x32), region = 28  ;;  %s190_s27 = sand.u32 (%p1452_p4), 1, %s1323_s16  }
  0x27   : > { %s1067_s28 = smul.u32 (%p1452_p4), 12, %s1347_s22  ;;  %s976_s25 = sshll.u32 (%p1452_p4), %s190_s27, 4 }
  0x28   : > { %s1761_s2 = sld [smem:[#allocation18_spill]] (%p1452_p4)  ;;  %s192_s9 = scalar_lea.vmem (%p1452_p4), [#allocation5], %s976_s25 }
  0x29   : > { %s194_s29 = sadd.s32 (%p1452_p4), %s1339_s20, %s1067_s28 }
  0x2a   : > { %s977_s4 = sshll.u32 (%p1452_p4), %s194_s29, 2 }
  0x2e   : > { %s196_s6 = scalar_lea.vmem %s1761_s2, %s977_s4 }
  0x2f   : > { %v212_v0 = vld [vmem:[%s196_s6] sm:$0xf]  ;;  %v214_v1 = vld [vmem:[%s196_s6 + $0xc] sm:$0xf]  ;;  %v216_v2 = vld [vmem:[%s196_s6 + $0x18] sm:$0xf] }
  0x30   : > { %213 = vst [vmem:[%s192_s9] sm:$0xf] %v212_v0  ;;  %215 = vst [vmem:[%s192_s9 + $0x4] sm:$0xf] %v214_v1  ;;  %v218_v3 = vld [vmem:[%s196_s6 + $0x24] sm:$0xf] }
  0x31   : > { %217 = vst [vmem:[%s192_s9 + $0x8] sm:$0xf] %v216_v2  ;;  %219 = vst [vmem:[%s192_s9 + $0xc] sm:$0xf] %v218_v3 }
  0x32 PF: > { %p978_p1 = scmp.ge.s32.totalorder %s1351_s23, 1  ;;  %p249_p2 = scmp.lt.s32.totalorder %s1351_s23, 19 }
  0x34   : > { %p250_p3 = pnand %p978_p1, %p249_p2 }
  0x35   : > { %s256_s25 = sand.u32 (!%p250_p3), 1, %s1319_s15   ;;  %s1746_s28 = sand.u32 (!%p250_p3), 1, %s1311_s13  }
  0x36   : > { %253 = sbr.rel (%p250_p3) target bundleno = 647 (0x287), region = 69  ;;  %s1498_s30 = sshll.u32 (!%p250_p3), %s256_s25, 4 }
  0x37   : > { %s980_s11 = sshll.u32 (!%p250_p3), %s1746_s28, 5  ;;  %p296_p4 = scmp.lt.s32.totalorder (!%p250_p3), %s1335_s19, 1 }
  0x38   : > { %p298_p5 = scmp.lt.s32.totalorder (!%p250_p3), %s1331_s18, 2  ;;  %s982_s27 = sshll.u32 (!%p250_p3), %s1327_s17, 4 }
  0x39   : > { %p307_p6 = scmp.lt.s32.totalorder (!%p250_p3), %s982_s27, 47  ;;  %s258_s16 = scalar_lea.vmem (!%p250_p3), [#allocation5], %s1498_s30 }
  0x3a   : > { %s1516_s26 = scalar_lea.vmem (!%p250_p3), [#allocation6], %s980_s11  ;;  %p984_p7 = scmp.ne.s32.totalorder (!%p250_p3), %s1327_s17, 0 }
  0x3d   : > { %s297_s29 = scalar_select %p296_p4, %s1335_s19, 1 }
  0x3e   : > { %s299_s4 = scalar_select %p298_p5, %s1331_s18, 2 }
  0x3f   : > { %s1068_s8 = smul.u32 3, %s297_s29  ;;  %s1787_s27 = smov (!%p307_p6, %s982_s27), 47  ;;  %v1353_v4 = vmov (!%p984_p7), -1e+30   ;;  %v1354_v5 = vmov (!%p984_p7), 0.0  }
  0x40   : > { %s1069_s9 = smul.u32 48, %s297_s29  ;;  %319 = vst [vmem:[#allocation2] sm:$0x1] (!%p984_p7), %v1353_v4  ;;  %320 = vst [vmem:[#allocation3] sm:$0x1] (!%p984_p7), %v1354_v5 }
  0x41   : > { %s301_s10 = sadd.s32 %s1068_s8, %s299_s4  ;;  %318 = sbr.rel (%p984_p7) target bundleno = 72 (0x48), region = 77  ;;  %321 = vst [vmem:[#allocation4] sm:$0xff] (!%p984_p7), %v1354_v5  ;;  %322 = vst [vmem:[#allocation4 + $0x8] sm:$0xff] (!%p984_p7), %v1354_v5 }
  0x42   : > { %s981_s6 = sshll.u32 %s301_s10, 1  ;;  %s310_s25 = sadd.s32 %s1069_s9, %s1787_s27  ;;  %323 = vst [vmem:[#allocation4 + $0x10] sm:$0xff] (!%p984_p7), %v1354_v5  ;;  %324 = vst [vmem:[#allocation4 + $0x18] sm:$0xff] (!%p984_p7), %v1354_v5 }
  0x43   : > { %s303_s15 = scalar_lea.vmem %s1736_s0, %s981_s6  ;;  %s983_s21 = sshll.u32 %s310_s25, 2 }
  0x44   : > { %s1513_s24 = scalar_lea.vmem %s1737_s1, %s983_s21 }
  0x48 PF: > { %v341_v6 = vld [vmem:[%s303_s15] sm:$0x3]  ;;  %vm407_vm0 = vcmask 1041408   ;;  %vm382_vm1 = vcmask 31744   ;;  %v1180_v9 = vld [vmem:[%s1513_s24 + $0x8] sm:$0xff]   ;;  %v1181_v10 = vld [vmem:[%s1513_s24 + $0x10] sm:$0xff]   ;;  %v509_v17 = vlaneseq }
  0x49   : > { %v1179_v7 = vld [vmem:[%s1513_s24] sm:$0xff]   ;;  %1066 = vmatprep.subr.msk.bf16.mxu0 %vm407_vm0, %v341_v6  ;;  %v409_v8 = vsel %vm407_vm0, %v341_v6, 0  ;;  %v1182_v11 = vld [vmem:[%s1513_s24 + $0x18] sm:$0xff]   ;;  %v1184_v13 = vld [vmem:[%s1513_s24 + $0x28] sm:$0xff]   ;;  %s1001_s2 = sshll.u32 %s1327_s17, 7  ;;  %p1004_p8 = scmp.ne.s32.totalorder %s1327_s17, 2 }
  0x4a   : > { %1029 = vmatpush3.bf16.msra.mxu0 %v409_v8  ;;  %1030 = vmatprep.mubr.msk.bf16.mxu0 %vm382_vm1, %v1179_v7  ;;  %v1183_v12 = vld [vmem:[%s1513_s24 + $0x20] sm:$0xff]   ;;  %v1185_v14 = vld [vmem:[%s1513_s24 + $0x30] sm:$0xff]   ;;  %v1186_v15 = vld [vmem:[%s1513_s24 + $0x38] sm:$0xff]   ;;  %v1537_v18 = vshrl.u32 %v509_v17, 7  ;;  %v1542_v21 = vstv %s1001_s2 }
  0x4b   : > { %v1187_v16 = vld [vmem:[%s258_s16] sm:$0xff]  }
  0x4c   : > { %1062 = vmatprep.mubr.bf16.mxu1 %v1187_v16  ;;  %v512_v19 = vadd.s32 16, %v1537_v18  ;;  %v516_v20 = vadd.s32 48, %v1537_v18  ;;  %v513_v22 = vadd.s32 24, %v1537_v18  ;;  %v514_v23 = vadd.s32 32, %v1537_v18 }
  0x4d   : > { %1031 = vmatmul.mubr.msk.bf16.vlgmr.msra.gmra.mrb[0].mxu0 %vm382_vm1, %v1180_v9  ;;  %v511_v25 = vadd.s32 8, %v1537_v18  ;;  %v517_v26 = vadd.s32 56, %v1537_v18  ;;  %v515_v27 = vadd.s32 40, %v1537_v18  ;;  %v527_v32 = vadd.s32 %v1542_v21, %v1537_v18 }
  0x4e   : > { %1034 = vmatprep.mubr.msk.bf16.mxu0 %vm382_vm1, %v1181_v10  ;;  %v529_v29 = vadd.s32 %v1542_v21, %v512_v19  ;;  %v533_v31 = vadd.s32 %v1542_v21, %v516_v20  ;;  %v530_v33 = vadd.s32 %v1542_v21, %v513_v22  ;;  %v531_v35 = vadd.s32 %v1542_v21, %v514_v23 }
  0x4f   : > { %v528_v36 = vadd.s32 %v1542_v21, %v511_v25  ;;  %v534_v37 = vadd.s32 %v1542_v21, %v517_v26  ;;  %v532_v38 = vadd.s32 %v1542_v21, %v515_v27  ;;  %v520_v39 = vadd.s32 80, %v1537_v18 }
  0x50   : > { %vm545_vm2 = vcmp.lt.s32.totalorder %v529_v29, 324  ;;  %vm549_vm3 = vcmp.lt.s32.totalorder %v533_v31, 324  ;;  %vm543_vm4 = vcmp.lt.s32.totalorder %v527_v32, 324  ;;  %vm546_vm5 = vcmp.lt.s32.totalorder %v530_v33, 324 }
  0x51   : > { %vm547_vm6 = vcmp.lt.s32.totalorder %v531_v35, 324  ;;  %v518_v40 = vadd.s32 64, %v1537_v18  ;;  %vm544_vm7 = vcmp.lt.s32.totalorder %v528_v36, 324  ;;  %vm550_vm8 = vcmp.lt.s32.totalorder %v534_v37, 324 }
  0x52   : > { %vm548_vm9 = vcmp.lt.s32.totalorder %v532_v38, 324  ;;  %v521_v42 = vadd.s32 88, %v1537_v18  ;;  %v519_v46 = vadd.s32 72, %v1537_v18  ;;  %v537_v51 = vadd.s32 %v1542_v21, %v520_v39 }
  0x53   : > { %v535_v56 = vadd.s32 %v1542_v21, %v518_v40  ;;  %v524_v63 = vadd.s32 112, %v1537_v18  ;;  %v522_v0 = vadd.s32 96, %v1537_v18  ;;  %v525_v2 = vadd.s32 120, %v1537_v18  ;;  %v607_v40 = vld [vmem:[#allocation2] sm:$0x1] }
  0x54   : > { %v538_v60 = vadd.s32 %v1542_v21, %v521_v42  ;;  %v536_v62 = vadd.s32 %v1542_v21, %v519_v46  ;;  %vm553_vm10 = vcmp.lt.s32.totalorder %v537_v51, 324  ;;  %v523_v5 = vadd.s32 104, %v1537_v18 }
  0x55   : > { %1035 = vmatmul.mubr.msk.bf16.gmra.mrb[4].mxu0 %vm382_vm1, %v1182_v11  ;;  %vm551_vm11 = vcmp.lt.s32.totalorder %v535_v56, 324  ;;  %v541_v9 = vadd.s32 %v1542_v21, %v524_v63  ;;  %v542_v16 = vadd.s32 %v1542_v21, %v525_v2  ;;  %v1623_v42 = vsub.s32 0, %v1537_v18 }
  0x56   : > { %1038 = vmatprep.mubr.msk.bf16.mxu0 %vm382_vm1, %v1183_v12  ;;  %vm554_vm12 = vcmp.lt.s32.totalorder %v538_v60, 324  ;;  %vm552_vm13 = vcmp.lt.s32.totalorder %v536_v62, 324  ;;  %v540_v19 = vadd.s32 %v1542_v21, %v523_v5 }
  0x57   : > { %vm557_vm14 = vcmp.lt.s32.totalorder %v541_v9, 324  ;;  %vm558_vm0 = vcmp.lt.s32.totalorder %v542_v16, 324 }
  0x5d   : > { %1039 = vmatmul.mubr.msk.bf16.gmra.mrb[8].mxu0 %vm382_vm1, %v1184_v13  ;;  %v539_v13 = vadd.s32 %v1542_v21, %v522_v0 }
  0x5e   : > { %1042 = vmatprep.mubr.msk.bf16.mxu0 %vm382_vm1, %v1185_v14 }
  0x5f   : > { %vm555_vm15 = vcmp.lt.s32.totalorder %v539_v13, 324 }
  0x65   : > { %1043 = vmatmul.mubr.msk.bf16.gmra.mrb[12].mxu0 %vm382_vm1, %v1186_v15  ;;  %vm556_vm1 = vcmp.lt.s32.totalorder %v540_v19, 324 }
 0x120   : > { %v1032_v24 = vpop.f32.mrb[0].mxu0 }
 0x121   : > { %v445_v28 = vpop.f32.mrb[1].mxu0  ;;  %v1561_v43 = vsel %vm545_vm2, %v1032_v24, -1e+30 }
 0x122   : > { %v1033_v30 = vpop.f32.mrb[2].mxu0  ;;  %v1566_v47 = vsel %vm543_vm4, %v445_v28, -1e+30 }
 0x123   : > { %v448_v34 = vpop.f32.mrb[3].mxu0  ;;  %v1574_v52 = vsel %vm546_vm5, %v1033_v30, -1e+30 }
 0x124   : > { %v1582_v57 = vsel %vm544_vm7, %v448_v34, -1e+30 }
 0x128   : > { %v1036_v41 = vpop.f32.mrb[4].mxu0 }
 0x129   : > { %v1563_v44 = vsel %vm549_vm3, %v1036_v41, -1e+30  ;;  %v461_v45 = vpop.f32.mrb[5].mxu0 }
 0x12a   : > { %v610_v48 = vmax.f32 %v1561_v43, %v1563_v44  ;;  %v1570_v49 = vsel %vm547_vm6, %v461_v45, -1e+30  ;;  %v1037_v50 = vpop.f32.mrb[6].mxu0 }
 0x12b   : > { %v608_v53 = vmax.f32 %v1566_v47, %v1570_v49  ;;  %v1578_v54 = vsel %vm550_vm8, %v1037_v50, -1e+30  ;;  %v464_v55 = vpop.f32.mrb[7].mxu0 }
 0x12c   : > { %v611_v58 = vmax.f32 %v1574_v52, %v1578_v54  ;;  %v1587_v59 = vsel %vm548_vm9, %v464_v55, -1e+30 }
 0x12d   : > { %v609_v61 = vmax.f32 %v1582_v57, %v1587_v59 }
 0x130   : > { %v1040_v1 = vpop.f32.mrb[8].mxu0 }
 0x131   : > { %v1596_v3 = vsel %vm553_vm10, %v1040_v1, -1e+30  ;;  %v477_v4 = vpop.f32.mrb[9].mxu0 }
 0x132   : > { %v614_v6 = vmax.f32 %v610_v48, %v1596_v3  ;;  %v1600_v7 = vsel %vm551_vm11, %v477_v4, -1e+30  ;;  %v1041_v8 = vpop.f32.mrb[10].mxu0 }
 0x133   : > { %v612_v10 = vmax.f32 %v608_v53, %v1600_v7  ;;  %v1604_v11 = vsel %vm554_vm12, %v1041_v8, -1e+30  ;;  %v480_v12 = vpop.f32.mrb[11].mxu0 }
 0x134   : > { %v615_v14 = vmax.f32 %v611_v58, %v1604_v11  ;;  %v1608_v15 = vsel %vm552_vm13, %v480_v12, -1e+30 }
 0x135   : > { %v613_v17 = vmax.f32 %v609_v61, %v1608_v15 }
 0x138   : > { %v1044_v20 = vpop.f32.mrb[12].mxu0 }
 0x139   : > { %v1613_v22 = vsel %vm557_vm14, %v1044_v20, -1e+30  ;;  %v493_v23 = vpop.f32.mrb[13].mxu0 }
 0x13a   : > { %v618_v24 = vmax.f32 %v614_v6, %v1613_v22  ;;  %v1616_v25 = vsel %vm555_vm15, %v493_v23, -1e+30  ;;  %v1045_v26 = vpop.f32.mrb[14].mxu0 }
 0x13b   : > { %v616_v27 = vmax.f32 %v612_v10, %v1616_v25  ;;  %v1619_v28 = vsel %vm558_vm0, %v1045_v26, -1e+30  ;;  %v496_v29 = vpop.f32.mrb[15].mxu0 }
 0x13c   : > { %v619_v21 = vmax.f32 %v615_v14, %v1619_v28  ;;  %v604_v30 = vsel %vm556_vm1, %v496_v29, -1e+30 }
 0x13d   : > { %v617_v31 = vmax.f32 %v613_v17, %v604_v30 }
 0x13e   : > { %v621_v32 = vmax.f32 %v618_v24, %v619_v21 }
 0x13f   : > { %v620_v33 = vmax.f32 %v616_v27, %v617_v31 }
 0x141   : > { %v622_v34 = vmax.f32 %v620_v33, %v621_v32 }
 0x143   : > { %v623_v35 = vrot.slane %v622_v34, 4 }
 0x145   : > { %v624_v36 = vmax.f32 %v622_v34, %v623_v35 }
 0x147   : > { %v625_v37 = vrot.slane %v624_v36, 2 }
 0x149   : > { %v626_v38 = vmax.f32 %v624_v36, %v625_v37 }
 0x14b   : > { %v627_v39 = vrot.slane %v626_v38, 1 }
 0x14d   : > { %v628_v41 = vmax.f32 %v626_v38, %v627_v39 }
 0x14f   : > { %v629_v45 = vmax.f32 %v607_v40, %v628_v41 }
 0x151   : > { %v630_v46 = vsub.f32 %v607_v40, %v629_v45  ;;  %v637_v48 = vrot.slane %v629_v45, %v1623_v42  ;;  %807 = vst [vmem:[#allocation2] sm:$0x1] %v629_v45 }
 0x153   : > { %v631_v50 = vmul.f32 1.442695, %v630_v46  ;;  %v652_v51 = vsub.f32 %v604_v30, %v637_v48  ;;  %v639_v53 = vsub.f32 %v1566_v47, %v637_v48  ;;  %v640_v55 = vsub.f32 %v1582_v57, %v637_v48 }
 0x154   : > { %v641_v56 = vsub.f32 %v1561_v43, %v637_v48  ;;  %v642_v58 = vsub.f32 %v1574_v52, %v637_v48  ;;  %v643_v60 = vsub.f32 %v1570_v49, %v637_v48  ;;  %v644_v18 = vsub.f32 %v1587_v59, %v637_v48 }
 0x155   : > { %1189 = vpow2.f32 %v631_v50  ;;  %v681_v61 = vmul.f32 1.442695, %v652_v51  ;;  %v645_v62 = vsub.f32 %v1563_v44, %v637_v48  ;;  %v646_v63 = vsub.f32 %v1578_v54, %v637_v48 }
 0x156   : > { %v647_v0 = vsub.f32 %v1600_v7, %v637_v48  ;;  %v648_v47 = vsub.f32 %v1608_v15, %v637_v48  ;;  %v649_v57 = vsub.f32 %v1596_v3, %v637_v48  ;;  %v650_v43 = vsub.f32 %v1604_v11, %v637_v48 }
 0x157   : > { %v651_v52 = vsub.f32 %v1616_v25, %v637_v48  ;;  %v655_v1 = vmul.f32 1.442695, %v639_v53  ;;  %v657_v49 = vmul.f32 1.442695, %v640_v55  ;;  %1191 = vpow2.f32 %v681_v61 }
 0x158   : > { %v659_v59 = vmul.f32 1.442695, %v641_v56  ;;  %v661_v2 = vmul.f32 1.442695, %v642_v58  ;;  %v653_v4 = vsub.f32 %v1613_v22, %v637_v48  ;;  %v663_v44 = vmul.f32 1.442695, %v643_v60 }
 0x159   : > { %1193 = vpow2.f32 %v655_v1  ;;  %v665_v54 = vmul.f32 1.442695, %v644_v18  ;;  %v667_v5 = vmul.f32 1.442695, %v645_v62  ;;  %v654_v6 = vsub.f32 %v1619_v28, %v637_v48  ;;  %v687_v1 = vld [vmem:[#allocation3] sm:$0x1] }
 0x15a   : > { %1195 = vpow2.f32 %v657_v49  ;;  %v669_v3 = vmul.f32 1.442695, %v646_v63  ;;  %v671_v7 = vmul.f32 1.442695, %v647_v0  ;;  %v673_v8 = vmul.f32 1.442695, %v648_v47 }
 0x15b   : > { %1197 = vpow2.f32 %v659_v59  ;;  %v675_v10 = vmul.f32 1.442695, %v649_v57  ;;  %v677_v11 = vmul.f32 1.442695, %v650_v43  ;;  %v679_v13 = vmul.f32 1.442695, %v651_v52 }
 0x15c   : > { %1199 = vpow2.f32 %v661_v2  ;;  %v683_v15 = vmul.f32 1.442695, %v653_v4  ;;  %v685_v17 = vmul.f32 1.442695, %v654_v6  ;;  %v1188_v47 = vld [vmem:[%s258_s16 + $0x8] sm:$0xff]  }
 0x15d   : > { %1201 = vpow2.f32 %v663_v44  ;;  %v714_v44 = vld [vmem:[#allocation4 + $0x10] sm:$0xff] }
 0x15e   : > { %1203 = vpow2.f32 %v665_v54  ;;  %v712_v54 = vld [vmem:[#allocation4] sm:$0xff] }
 0x15f   : > { %v1641_v9 = vpop.eup %1189  ;;  %1205 = vpow2.f32 %v667_v5  ;;  %v715_v5 = vld [vmem:[#allocation4 + $0x18] sm:$0xff] }
 0x160   : > { %1207 = vpow2.f32 %v669_v3  ;;  %v1645_v12 = vrot.slane %v1641_v9, %v1623_v42  ;;  %v688_v59 = vmul.f32 %v1641_v9, %v687_v1  ;;  %v713_v3 = vld [vmem:[#allocation4 + $0x8] sm:$0xff] }
 0x161   : > { %1209 = vpow2.f32 %v671_v7  ;;  %v1192_v14 = vpop.eup %1191 }
 0x162   : > { %1211 = vpow2.f32 %v673_v8  ;;  %v724_v6 = vmul.f32 %v1645_v12, %v714_v44  ;;  %v722_v8 = vmul.f32 %v1645_v12, %v712_v54  ;;  %v723_v9 = vmul.f32 %v1645_v12, %v713_v3 }
 0x163   : > { %v1194_v16 = vpop.eup %1193  ;;  %1213 = vpow2.f32 %v675_v10 }
 0x164   : > { %v1196_v19 = vpop.eup %1195  ;;  %1215 = vpow2.f32 %v677_v11 }
 0x165   : > { %v1198_v20 = vpop.eup %1197  ;;  %1217 = vpow2.f32 %v679_v13  ;;  %v689_v22 = vadd.f32 %v1196_v19, %v1194_v16  ;;  %v730_v23 = vpack.c.bf16 %v1196_v19, %v1194_v16  ;;  %v725_v13 = vmul.f32 %v1645_v12, %v715_v5 }
 0x166   : > { %v1200_v24 = vpop.eup %1199  ;;  %1219 = vpow2.f32 %v683_v15 }
 0x167   : > { %v1202_v25 = vpop.eup %1201  ;;  %v690_v26 = vadd.f32 %v1198_v20, %v689_v22  ;;  %1046 = vmatprep.subr.bf16.mxu1 %v730_v23  ;;  %v731_v27 = vpack.c.bf16 %v1200_v24, %v1198_v20  ;;  %1221 = vpow2.f32 %v685_v17 }
 0x168   : > { %v1204_v28 = vpop.eup %1203  ;;  %1047 = vmatpush3.bf16.msra.mxu1 %v730_v23 }
 0x169   : > { %v1206_v29 = vpop.eup %1205  ;;  %v691_v21 = vadd.f32 %v1200_v24, %v690_v26  ;;  %1048 = vmatprep.subr.bf16.mxu1 %v731_v27  ;;  %v732_v30 = vpack.c.bf16 %v1204_v28, %v1202_v25 }
 0x16a   : > { %v1208_v31 = vpop.eup %1207 }
 0x16b   : > { %v1210_v32 = vpop.eup %1209  ;;  %v692_v33 = vadd.f32 %v1202_v25, %v691_v21  ;;  %v733_v34 = vpack.c.bf16 %v1208_v31, %v1206_v29 }
 0x16c   : > { %v1212_v35 = vpop.eup %1211  ;;  %1049 = vmatpush3.bf16.msra.mxu1 %v731_v27 }
 0x16d   : > { %v1214_v36 = vpop.eup %1213  ;;  %v693_v37 = vadd.f32 %v1204_v28, %v692_v33  ;;  %1050 = vmatprep.subr.bf16.mxu1 %v732_v30  ;;  %v734_v38 = vpack.c.bf16 %v1212_v35, %v1210_v32 }
 0x16e   : > { %v1216_v39 = vpop.eup %1215 }
 0x16f   : > { %v1218_v40 = vpop.eup %1217  ;;  %v694_v41 = vadd.f32 %v1206_v29, %v693_v37  ;;  %v735_v45 = vpack.c.bf16 %v1216_v39, %v1214_v36 }
 0x170   : > { %v1220_v46 = vpop.eup %1219  ;;  %1051 = vmatpush3.bf16.msra.mxu1 %v732_v30  ;;  %v736_v48 = vpack.c.bf16 %v1192_v14, %v1218_v40 }
 0x171   : > { %v1222_v50 = vpop.eup %1221  ;;  %v695_v51 = vadd.f32 %v1208_v31, %v694_v41  ;;  %1052 = vmatprep.subr.bf16.mxu1 %v733_v34 }
 0x172   : > { %v737_v53 = vpack.c.bf16 %v1222_v50, %v1220_v46 }
 0x173   : > { %v696_v55 = vadd.f32 %v1210_v32, %v695_v51 }
 0x174   : > { %1053 = vmatpush3.bf16.msra.mxu1 %v733_v34 }
 0x175   : > { %v697_v56 = vadd.f32 %v1212_v35, %v696_v55  ;;  %1054 = vmatprep.subr.bf16.mxu1 %v734_v38 }
 0x177   : > { %v698_v58 = vadd.f32 %v1214_v36, %v697_v56 }
 0x178   : > { %1055 = vmatpush3.bf16.msra.mxu1 %v734_v38 }
 0x179   : > { %v699_v60 = vadd.f32 %v1216_v39, %v698_v58  ;;  %1056 = vmatprep.subr.bf16.mxu1 %v735_v45 }
 0x17b   : > { %v700_v18 = vadd.f32 %v1218_v40, %v699_v60 }
 0x17c   : > { %1057 = vmatpush3.bf16.msra.mxu1 %v735_v45 }
 0x17d   : > { %v701_v61 = vadd.f32 %v1192_v14, %v700_v18  ;;  %1058 = vmatprep.subr.bf16.mxu1 %v736_v48 }
 0x17f   : > { %v702_v62 = vadd.f32 %v1220_v46, %v701_v61 }
 0x180   : > { %1059 = vmatpush3.bf16.msra.mxu1 %v736_v48 }
 0x181   : > { %v703_v63 = vadd.f32 %v1222_v50, %v702_v62  ;;  %1060 = vmatprep.subr.bf16.mxu1 %v737_v53 }
 0x183   : > { %v704_v0 = vrot.slane %v703_v63, 4 }
 0x184   : > { %1061 = vmatpush3.bf16.msra.mxu1 %v737_v53 }
 0x185   : > { %v705_v57 = vadd.f32 %v704_v0, %v703_v63 }
 0x187   : > { %v706_v43 = vrot.slane %v705_v57, 2  ;;  %1063 = vmatmul.mubr.bf16.vlgmr.msra.gmra.mrb[0].mxu1 %v1188_v47 }
 0x189   : > { %v707_v52 = vadd.f32 %v706_v43, %v705_v57 }
 0x18b   : > { %v708_v49 = vrot.slane %v707_v52, 1 }
 0x18d   : > { %v709_v2 = vadd.f32 %v708_v49, %v707_v52 }
 0x18f   : > { %v710_v4 = vadd.f32 %v709_v2, %v688_v59 }
 0x191   : > { %711 = vst [vmem:[#allocation3] sm:$0x1] %v710_v4 }
 0x198   : > { %v812_v20 = vld [vmem:[#allocation3] sm:$0x1] (!%p1004_p8) }
 0x199   : > { %1223 = vrcp.f32 (!%p1004_p8), %v812_v20 }
 0x1a3   : > { %v1224_v23 = vpop.eup (!%p1004_p8), %1223 }
 0x1a4   : > { %v822_v26 = vrot.slane (!%p1004_p8), %v1224_v23, %v1623_v42 }
 0x25a   : > { %v1064_v7 = vpop.f32.mrb[0].mxu1  ;;  %811 = sbr.rel (%p1004_p8) target bundleno = 619 (0x26b), region = 81 }
 0x25b   : > { %v801_v10 = vadd.f32 %v1064_v7, %v724_v6  ;;  %v784_v11 = vpop.f32.mrb[1].mxu1 }
 0x25c   : > { %v799_v14 = vadd.f32 %v784_v11, %v722_v8  ;;  %v1065_v15 = vpop.f32.mrb[2].mxu1 }
 0x25d   : > { %805 = vst [vmem:[#allocation4 + $0x10] sm:$0xff] %v801_v10  ;;  %v802_v16 = vadd.f32 %v1065_v15, %v725_v13  ;;  %v787_v17 = vpop.f32.mrb[3].mxu1 }
 0x25e   : > { %803 = vst [vmem:[#allocation4] sm:$0xff] %v799_v14  ;;  %v800_v19 = vadd.f32 %v787_v17, %v723_v9 }
 0x25f   : > { %806 = vst [vmem:[#allocation4 + $0x18] sm:$0xff] %v802_v16 }
 0x260   : > { %804 = vst [vmem:[#allocation4 + $0x8] sm:$0xff] %v800_v19 }
 0x264   : > { %v816_v12 = vld [vmem:[#allocation4 + $0x10] sm:$0xff] }
 0x265   : > { %v814_v22 = vld [vmem:[#allocation4] sm:$0xff]  ;;  %v826_v29 = vmul.f32 %v822_v26, %v816_v12 }
 0x266   : > { %v817_v25 = vld [vmem:[#allocation4 + $0x18] sm:$0xff]  ;;  %v824_v27 = vmul.f32 %v822_v26, %v814_v22 }
 0x267   : > { %v815_v24 = vld [vmem:[#allocation4 + $0x8] sm:$0xff]  ;;  %v827_v21 = vmul.f32 %v822_v26, %v817_v25  ;;  %830 = vst [vmem:[%s1516_s26 + $0x10] sm:$0xff] %v826_v29 }
 0x268   : > { %v825_v28 = vmul.f32 %v822_v26, %v815_v24  ;;  %828 = vst [vmem:[%s1516_s26] sm:$0xff] %v824_v27 }
 0x269   : > { %831 = vst [vmem:[%s1516_s26 + $0x18] sm:$0xff] %v827_v21 }
 0x26a   : > { %829 = vst [vmem:[%s1516_s26 + $0x8] sm:$0xff] %v825_v28 }
 0x26b PF: > { %s1070_s16 = smul.u32 12, %s1335_s19  ;;  %s847_s17 = sshll.u32 %s1516_s26, 4  ;;  %s1663_s17 = int_to_ptr.vmem [resolvable:$true] %s847_s17 }
 0x26c   : > { %s1762_s30 = sand.u32 1, %s1311_s13   ;;  %s1225_s27 = scalar_lea.vmem %s1663_s17, 512 }
 0x26d   : > { %s844_s20 = sadd.s32 %s1331_s18, %s1070_s16  ;;  %s1672_s11 = scalar_lea.sflag [#allocation7], %s1762_s30 }
 0x26e   : > { %s1006_s21 = sshll.u32 %s844_s20, 7  ;;  %p1226_p10 = scmp.ne.s32.totalorder %s1663_s17, %s1225_s27 }
 0x26f   : > { %s1668_s28 = scalar_lea.hbm %s1739_s3, %s1006_s21  ;;  %s1355_s18 = smov [#allocation6]  }
 0x270   : > { %p1227_p12 = pnand %p1226_p10, %p1465_p9  ;;  %s1229_s19 = sshll.u32 %s1355_s18, 4  ;;  %s1230_s19 = int_to_ptr.vmem [resolvable:$false] %s1229_s19 }
 0x271   : > { %s1231_s26 = scalar_lea.vmem %s1230_s19, 1024  ;;  %p1232_p0 = scmp.lt.s32.totalorder %s1663_s17, %s1230_s19 }
 0x272   : > { %p1228_p13 = pneg %p1227_p12  ;;  %p1233_p1 = scmp.lt.s32.totalorder %s1231_s26, %s1225_s27 }
 0x274   : > { %p1234_p2 = por %p1233_p1, %p1232_p0 }
 0x276   : > { %p1235_p3 = pnand %p1234_p2, %p1228_p13 }
 0x278   : > { %1238 = shalt.err (!%p1235_p3)
}
 0x279   : > { %s1239_s29 = scalar_lea.hbm %s1668_s28, 512  ;;  %s1243_s10 = scalar_lea.hbm %s1739_s3, 3072 }
 0x27a   : > { %p1240_p4 = scmp.ne.s32.totalorder %s1668_s28, %s1239_s29  ;;  %p1244_p7 = scmp.lt.u32.totalorder %s1668_s28, %s1739_s3 }
 0x27b   : > { %p1245_p8 = scmp.lt.u32.totalorder %s1243_s10, %s1239_s29  ;;  %p1247_p12 = scmp.lt.u32.totalorder %s1239_s29, %s1668_s28 }
 0x27c   : > { %p1241_p5 = pnand %p1240_p4, %p1465_p9 }
 0x27d   : > { %p1246_p10 = por %p1245_p8, %p1244_p7 }
 0x27e   : > { %p1242_p6 = pneg %p1241_p5 }
 0x27f   : > { %p1248_p13 = por %p1247_p12, %p1246_p10 }
 0x281   : > { %p1249_p0 = pnand %p1248_p13, %p1242_p6 }
 0x283   : > { %1252 = shalt.err (!%p1249_p0)
}
 0x284   : > { %s1356_s15 = smov 128   ;;  %s1357_s25 = smov 384  }
 0x285   : > { %s1358_s2 = smov 8  }
 0x286   : > { %1071 = dma.vmem_to_hbm [thread:$0]  (%p1465_p9), %s1663_s17, 512, %s1668_s28, %s1672_s11, %s1356_s15, %s1357_s25, %s1358_s2  }
 0x287 PF: > { %p1077_p1 = scmp.ge.s32.totalorder %s1351_s23, 2  ;;  %s862_s16 = sand.u32 1, %s1307_s12  }
 0x288   : > { %s863_s20 = scalar_lea.sflag [#allocation7], %s862_s16 }
 0x289   : > { %p1074_p2 = pnand %p1077_p1, %p1472_p11 }
 0x28b   : > { %1302 = dma.done.wait (!%p1074_p2), %s863_s20, 512  }
 0x28c   : > { %1304 = vsyncadd (!%p1074_p2), %s863_s20, 4294966784  ;;  %s16_s23 = sadd.s32 1, %s1351_s23   ;;  %s1763_s21 = sld [smem:[#allocation17_spill]] }
 0x28d   : > { %p13_p3 = scmp.ge.s32.totalorder %s16_s23, 20   ;;  %s1764_s15 = sld [smem:[#allocation9_spill]] }
 0x28e   : > { %s1765_s16 = sld [smem:[#allocation16_spill]]  ;;  %s1766_s17 = sld [smem:[#allocation10_spill]] }
 0x28f   : > { %s1767_s18 = sld [smem:[#allocation11_spill]]  ;;  %s1768_s19 = sld [smem:[#allocation12_spill]] }
 0x290   : > { %s1769_s20 = sld [smem:[#allocation13_spill]]  ;;  %s1770_s5 = sld [smem:[#allocation14_spill]] }
 0x291   : > { %s1771_s22 = sld [smem:[#allocation15_spill]]  ;;  %s1772_s12 = smov %s1311_s13 }
 0x292   : > { %s1773_s13 = smov %s1315_s14  ;;  %s1774_s14 = smov %s1763_s21 }
 0x293   :  { %15 = sbr.rel (!%p13_p3) target bundleno = 9 (0x9), region = 127 }
 0x296   : > { %s1775_s21 = smov %s1770_s5 }
 0x29a   :  { %868 = vsyncpa [#allocation7], 1 }
 0x29b   :  { %870 = vsyncpa [#allocation7 + $0x1], 1 }

</bundles_post_ra>
